<compile_context>
chip_gen: v5e
topology: v5e:2x2
jax: 0.10.0
libtpu: 0.0.40
codegen_flags: <defaults>
</compile_context>

<pallas_src>
import jax
import jax.numpy as jnp
from jax.experimental import pallas as pl
from jax.experimental.pallas import tpu as pltpu


def generator_kernel(z_ref, w1_ref, b1_ref, gamma_ref, beta_ref,
                     w2_ref, b2_ref, out_ref):
    z = z_ref[...]                                                    # [B, T]

    # ---- Linear 1: [B, T] @ [T, M] + [1, M] ----
    h = jnp.dot(z, w1_ref[...], preferred_element_type=jnp.float32) + b1_ref[...]

    # ---- LeakyReLU (negative_slope = 0.01): max(h, 0.01*h) ----
    h = jnp.maximum(h, 0.01 * h)

    # ---- BatchNorm1d, training-mode batch stats (eps=1e-5, biased var) ----
    # One-pass stats: the two sublane reductions are independent.
    inv_b = 1.0 / h.shape[0]
    s = jnp.sum(h, axis=0, keepdims=True)                             # [1, M]
    sq = jnp.sum(h * h, axis=0, keepdims=True)                        # [1, M]
    mean = s * inv_b
    var = sq * inv_b - mean * mean
    # Fold the affine (gamma, beta) into a single scale/shift.
    scale = gamma_ref[...] * jax.lax.rsqrt(var + 1e-5)                # [1, M]
    shift = beta_ref[...] - mean * scale                              # [1, M]
    h = h * scale + shift

    # ---- Linear 2: [B, M] @ [M, V] + [1, V] ----
    logits = jnp.dot(h, w2_ref[...], preferred_element_type=jnp.float32) + b2_ref[...]

    # ---- Softmax over dim=1 (vocab axis), numerically stable ----
    m = jnp.max(logits, axis=1, keepdims=True)
    e = jnp.exp(logits - m)
    denom = jnp.sum(e, axis=1, keepdims=True)
    out_ref[...] = e * pl.reciprocal(denom, approx=False)


def generator_forward(z, w1, b1, gamma, beta, w2, b2):
    B = z.shape[0]
    V = w2.shape[1]
    # Gridless single invocation: every operand fits comfortably in VMEM
    # (<40 KiB total on all of v5e/v6e/v7x), so no tiling / pipelining.
    vmem = pl.BlockSpec(memory_space=pltpu.MemorySpace.VMEM)
    return pl.pallas_call(
        generator_kernel,
        out_shape=jax.ShapeDtypeStruct((B, V), jnp.float32),
        in_specs=[vmem] * 7,
        out_specs=vmem,
    )(z, w1, b1, gamma, beta, w2, b2)


def reference_forward(z, w1, b1, gamma, beta, w2, b2):
    h = z @ w1 + b1
    h = jnp.where(h >= 0, h, 0.01 * h)
    mean = jnp.mean(h, axis=0, keepdims=True)
    var = jnp.mean((h - mean) ** 2, axis=0, keepdims=True)
    h = (h - mean) / jnp.sqrt(var + 1e-5)
    h = h * gamma + beta
    logits = h @ w2 + b2
    return jax.nn.softmax(logits, axis=1)


if __name__ == "__main__":
    # opt = {'num_topics': 16, 'enc_mid_layer': 32, 'vocab_size': 128}
    batch, num_topics, enc_mid_layer, vocab_size = 8, 16, 32, 128

    key = jax.random.PRNGKey(0)
    kz, k1, k2, k3, k4 = jax.random.split(key, 5)

    z = jax.random.normal(kz, (batch, num_topics), dtype=jnp.float32)

    # Deterministic parameter init (PyTorch-style uniform(-1/sqrt(in), 1/sqrt(in)))
    bound1 = 1.0 / jnp.sqrt(jnp.float32(num_topics))
    w1 = jax.random.uniform(k1, (num_topics, enc_mid_layer),
                            minval=-bound1, maxval=bound1, dtype=jnp.float32)
    b1 = jax.random.uniform(k2, (1, enc_mid_layer),
                            minval=-bound1, maxval=bound1, dtype=jnp.float32)

    gamma = jnp.ones((1, enc_mid_layer), dtype=jnp.float32)   # BatchNorm weight
    beta = jnp.zeros((1, enc_mid_layer), dtype=jnp.float32)   # BatchNorm bias

    bound2 = 1.0 / jnp.sqrt(jnp.float32(enc_mid_layer))
    w2 = jax.random.uniform(k3, (enc_mid_layer, vocab_size),
                            minval=-bound2, maxval=bound2, dtype=jnp.float32)
    b2 = jax.random.uniform(k4, (1, vocab_size),
                            minval=-bound2, maxval=bound2, dtype=jnp.float32)

    out = generator_forward(z, w1, b1, gamma, beta, w2, b2)
    out = jax.block_until_ready(out)

    ref = reference_forward(z, w1, b1, gamma, beta, w2, b2)
    assert out.shape == (batch, vocab_size)
    assert jnp.allclose(jnp.sum(out, axis=1), 1.0, atol=1e-5)
    assert jnp.allclose(out, ref, atol=1e-5, rtol=1e-5)

    print("KERNEL_OK")
</pallas_src>

<mosaic_0001>
module attributes {stable_mosaic.version = 11 : i64} {
  func.func @generator_kernel(%arg0: memref<8x16xf32, #tpu.memory_space<vmem>>, %arg1: memref<16x32xf32, #tpu.memory_space<vmem>>, %arg2: memref<1x32xf32, #tpu.memory_space<vmem>>, %arg3: memref<1x32xf32, #tpu.memory_space<vmem>>, %arg4: memref<1x32xf32, #tpu.memory_space<vmem>>, %arg5: memref<32x128xf32, #tpu.memory_space<vmem>>, %arg6: memref<1x128xf32, #tpu.memory_space<vmem>>, %arg7: memref<8x128xf32, #tpu.memory_space<vmem>>) attributes {dimension_semantics = [], scalar_prefetch = 0 : i64, scratch_operands = 0 : i64, tpu.core_type = #tpu.core_type<tc>} {
    %c0 = arith.constant 0 : index
    %c0_0 = arith.constant 0 : index
    %0 = vector.load %arg0[%c0, %c0_0] : memref<8x16xf32, #tpu.memory_space<vmem>>, vector<8x16xf32>
    %c0_1 = arith.constant 0 : index
    %c0_2 = arith.constant 0 : index
    %1 = vector.load %arg1[%c0_1, %c0_2] : memref<16x32xf32, #tpu.memory_space<vmem>>, vector<16x32xf32>
    %cst = arith.constant dense<0.000000e+00> : vector<8x32xf32>
    %2 = tpu.matmul %0, %1, %cst {dimension_numbers = #tpu.dot_dimension_numbers<[1], [0], [0], [1], [0, 0, 1, 1], [], []>} : vector<8x16xf32>, vector<16x32xf32>, vector<8x32xf32> -> vector<8x32xf32>
    %c0_3 = arith.constant 0 : index
    %c0_4 = arith.constant 0 : index
    %3 = vector.load %arg2[%c0_3, %c0_4] : memref<1x32xf32, #tpu.memory_space<vmem>>, vector<1x32xf32>
    %4 = vector.broadcast %3 : vector<1x32xf32> to vector<8x32xf32>
    %5 = arith.addf %2, %4 : vector<8x32xf32>
    %cst_5 = arith.constant 0.00999999977 : f32
    %6 = vector.broadcast %cst_5 : f32 to vector<8x32xf32>
    %7 = arith.mulf %6, %5 : vector<8x32xf32>
    %8 = arith.maximumf %5, %7 : vector<8x32xf32>
    %cst_6 = arith.constant dense<0.000000e+00> : vector<32xf32>
    %9 = vector.multi_reduction <add>, %8, %cst_6 [0] : vector<8x32xf32> to vector<32xf32>
    %10 = vector.shape_cast %9 : vector<32xf32> to vector<1x32xf32>
    %11 = arith.mulf %8, %8 : vector<8x32xf32>
    %cst_7 = arith.constant dense<0.000000e+00> : vector<32xf32>
    %12 = vector.multi_reduction <add>, %11, %cst_7 [0] : vector<8x32xf32> to vector<32xf32>
    %13 = vector.shape_cast %12 : vector<32xf32> to vector<1x32xf32>
    %cst_8 = arith.constant 1.250000e-01 : f32
    %14 = vector.broadcast %cst_8 : f32 to vector<1x32xf32>
    %15 = arith.mulf %10, %14 : vector<1x32xf32>
    %cst_9 = arith.constant 1.250000e-01 : f32
    %16 = vector.broadcast %cst_9 : f32 to vector<1x32xf32>
    %17 = arith.mulf %13, %16 : vector<1x32xf32>
    %18 = arith.mulf %15, %15 : vector<1x32xf32>
    %19 = arith.subf %17, %18 : vector<1x32xf32>
    %c0_10 = arith.constant 0 : index
    %c0_11 = arith.constant 0 : index
    %20 = vector.load %arg3[%c0_10, %c0_11] : memref<1x32xf32, #tpu.memory_space<vmem>>, vector<1x32xf32>
    %cst_12 = arith.constant 9.99999974E-6 : f32
    %21 = vector.broadcast %cst_12 : f32 to vector<1x32xf32>
    %22 = arith.addf %19, %21 : vector<1x32xf32>
    %23 = math.rsqrt %22 : vector<1x32xf32>
    %24 = arith.mulf %20, %23 : vector<1x32xf32>
    %c0_13 = arith.constant 0 : index
    %c0_14 = arith.constant 0 : index
    %25 = vector.load %arg4[%c0_13, %c0_14] : memref<1x32xf32, #tpu.memory_space<vmem>>, vector<1x32xf32>
    %26 = arith.mulf %15, %24 : vector<1x32xf32>
    %27 = arith.subf %25, %26 : vector<1x32xf32>
    %28 = vector.broadcast %24 : vector<1x32xf32> to vector<8x32xf32>
    %29 = arith.mulf %8, %28 : vector<8x32xf32>
    %30 = vector.broadcast %27 : vector<1x32xf32> to vector<8x32xf32>
    %31 = arith.addf %29, %30 : vector<8x32xf32>
    %c0_15 = arith.constant 0 : index
    %c0_16 = arith.constant 0 : index
    %32 = vector.load %arg5[%c0_15, %c0_16] : memref<32x128xf32, #tpu.memory_space<vmem>>, vector<32x128xf32>
    %cst_17 = arith.constant dense<0.000000e+00> : vector<8x128xf32>
    %33 = tpu.matmul %31, %32, %cst_17 {dimension_numbers = #tpu.dot_dimension_numbers<[1], [0], [0], [1], [0, 0, 1, 1], [], []>} : vector<8x32xf32>, vector<32x128xf32>, vector<8x128xf32> -> vector<8x128xf32>
    %c0_18 = arith.constant 0 : index
    %c0_19 = arith.constant 0 : index
    %34 = vector.load %arg6[%c0_18, %c0_19] : memref<1x128xf32, #tpu.memory_space<vmem>>, vector<1x128xf32>
    %35 = vector.broadcast %34 : vector<1x128xf32> to vector<8x128xf32>
    %36 = arith.addf %33, %35 : vector<8x128xf32>
    %cst_20 = arith.constant dense<0xFF800000> : vector<8xf32>
    %37 = vector.multi_reduction <maximumf>, %36, %cst_20 [1] : vector<8x128xf32> to vector<8xf32>
    %38 = vector.shape_cast %37 : vector<8xf32> to vector<8x1xf32>
    %39 = vector.broadcast %38 : vector<8x1xf32> to vector<8x128xf32>
    %40 = arith.subf %36, %39 : vector<8x128xf32>
    %41 = math.exp %40 : vector<8x128xf32>
    %cst_21 = arith.constant dense<0.000000e+00> : vector<8xf32>
    %42 = vector.multi_reduction <add>, %41, %cst_21 [1] : vector<8x128xf32> to vector<8xf32>
    %43 = vector.shape_cast %42 : vector<8xf32> to vector<8x1xf32>
    %44 = tpu.reciprocal %43 : vector<8x1xf32> -> vector<8x1xf32>
    %45 = vector.broadcast %44 : vector<8x1xf32> to vector<8x128xf32>
    %46 = arith.mulf %41, %45 : vector<8x128xf32>
    %c0_22 = arith.constant 0 : index
    %c0_23 = arith.constant 0 : index
    %47 = vector.load %arg7[%c0_22, %c0_23] : memref<8x128xf32, #tpu.memory_space<vmem>>, vector<8x128xf32>
    tpu.vector_store %arg7[%c0_22, %c0_23], %46 {strides = array<i32>} : memref<8x128xf32, #tpu.memory_space<vmem>>, vector<8x128xf32>,
    return
  }
}

</mosaic_0001>

<bundles_post_ra>
// kernel: tpu_custom_call.1
= control target key start
LH: loop header
LB: loop body
LE: loop exit
PB: predicated region body
PF: predicated region fallthrough
CT: control target
= control target key end

     0   :  { %12 = vsyncpa [#allocation3], 0  ;;  %s412_s0 = inlined_call_operand.hbm [shape: f32[8,16], index: 0, kind: input, shape index: {}]   ;;  %s413_s1 = inlined_call_operand.hbm [shape: f32[16,32], index: 1, kind: input, shape index: {}]   ;;  %s414_s2 = inlined_call_operand.vmem [shape: f32[1,32], index: 2, kind: input, shape index: {}]   ;;  %s415_s3 = inlined_call_operand.vmem [shape: f32[1,32], index: 3, kind: input, shape index: {}]   ;;  %s416_s4 = inlined_call_operand.vmem [shape: f32[1,32], index: 4, kind: input, shape index: {}]   ;;  %s417_s5 = inlined_call_operand.hbm [shape: f32[32,128], index: 5, kind: input, shape index: {}]   ;;  %s418_s6 = inlined_call_operand.vmem [shape: f32[1,128], index: 6, kind: input, shape index: {}]   ;;  %s419_s7 = inlined_call_operand.hbm [shape: f32[8,128], index: 7, kind: output, shape index: {}]  }
   0x1   :  { %13 = vsyncpa [#allocation6], 0  ;;  %s30_s26 = sshll.u32 %s413_s1, 4  ;;  %s31_s26 = int_to_ptr.hbm [resolvable:$true] %s30_s26 }
   0x2   :  { %14 = vsyncpa [#allocation4], 0  ;;  %s339_s27 = smov [#allocation5]   ;;  %s20_s8 = sshll.u32 %s412_s0, 4  ;;  %s21_s8 = int_to_ptr.hbm [resolvable:$true] %s20_s8 }
   0x3   :  { %s32_s28 = sshll.u32 %s339_s27, 4  ;;  %s340_s9 = smov 128   ;;  %s33_s28 = int_to_ptr.vmem [resolvable:$true] %s32_s28 }
   0x4   :  { %s341_s10 = smov 8   ;;  %s342_s11 = smov [#allocation2]  }
   0x5   :  { %38 = dma.hbm_to_vmem [thread:$0]  %s31_s26, 256, %s33_s28, [#allocation6], %s340_s9, %s340_s9, %s341_s10  }
   0x6   :  { %s22_s12 = sshll.u32 %s342_s11, 4  ;;  %s49_s15 = sshll.u32 %s417_s5, 4  ;;  %s23_s12 = int_to_ptr.vmem [resolvable:$true] %s22_s12  ;;  %s50_s15 = int_to_ptr.hbm [resolvable:$true] %s49_s15 }
   0x7   :  { %25 = dma.hbm_to_vmem [thread:$0]  %s21_s8, 128, %s23_s12, [#allocation3]  }
   0x8   :  { %s343_s1 = smov [#allocation7]  }
   0x9   :  { %s51_s16 = sshll.u32 %s343_s1, 4  ;;  %s52_s16 = int_to_ptr.vmem [resolvable:$true] %s51_s16 }
   0xa   :  { %57 = dma.hbm_to_vmem [thread:$0]  %s50_s15, 512, %s52_s16, [#allocation6], %s340_s9, %s340_s9, %s341_s10  }
   0xb   :  { %333 = dma.done.wait [#allocation3], 128  }
   0xc   :  { %334 = vsyncadd [#allocation3], 4294967168 }
   0xd   :  { %335 = dma.done.wait [#allocation6], 768  }
   0xe   :  { %336 = vsyncadd [#allocation6], 4294966528  ;;  %v74_v0 = vld [vmem:[#allocation5 + $0x8] sm:$0xff]  ;;  %v73_v1 = vld [vmem:[#allocation5] sm:$0xff]  ;;  %vm79_vm0 = vcmask 130048   ;;  %vm105_vm1 = vcmask 261120  }
   0xf   :  { %97 = vmatpush.msra.mxu0 %v74_v0  ;;  %v72_v2 = vld [vmem:[#allocation2] sm:$0xff]  ;;  %v152_v3 = vld [vmem:[#allocation7 + $0x18] sm:$0xff]  ;;  %v151_v4 = vld [vmem:[#allocation7 + $0x10] sm:$0xff]  ;;  %s210_s23 = sshll.u32 %s419_s7, 4  ;;  %s211_s23 = int_to_ptr.hbm [resolvable:$true] %s210_s23 }
  0x10   :  { %172 = vmatpush.msra.mxu1 %v152_v3  ;;  %v150_v5 = vld [vmem:[#allocation7 + $0x8] sm:$0xff]  ;;  %v149_v6 = vld [vmem:[#allocation7] sm:$0xff] }
  0x11   :  { %98 = vmatpush.msra.mxu0 %v73_v1  ;;  %v229_v7 = vld [vmem:[%s414_s2] ss:$0 sm:$0xff] }
  0x12   :  { %221 = vmatmul.msk.f32.vlgmr.msra.gmra.mxu0 %vm79_vm0, %v72_v2  ;;  %173 = vmatpush.msra.mxu1 %v151_v4  ;;  %v125_v37 = vld [vmem:[%s415_s3] sm:$0x1]  ;;  %s344_s3 = smov [#allocation8]  }
  0x13   :  { %v138_v41 = vld [vmem:[%s416_s4] sm:$0x1]  ;;  %s208_s4 = sshll.u32 %s344_s3, 4  ;;  %s209_s4 = int_to_ptr.vmem [resolvable:$true] %s208_s4 }
  0x14   :  { %174 = vmatpush.msra.mxu1 %v150_v5  ;;  %v230_v48 = vld [vmem:[%s418_s6] ss:$0 sm:$0xff] }
  0x16   :  { %175 = vmatpush.msra.mxu1 %v149_v6 }
  0x8f   :  { %v100_v8 = vpop.f32.mrf.mxu0 }
  0x90   :  { %v101_v9 = vadd.f32 %v229_v7, %v100_v8 }
  0x92   :  { %v103_v10 = vmul.f32 0.01, %v101_v9 }
  0x94   :  { %v104_v11 = vmax.f32 %v101_v9, %v103_v10 }
  0x96   :  { %v106_v12 = vsel %vm105_vm1, %v104_v11, 0.0  ;;  %v113_v13 = vmul.f32 %v104_v11, %v104_v11 }
  0x97   :  { %v107_v14 = vrot.slane %v106_v12, 4 }
  0x98   :  { %v114_v15 = vsel %vm105_vm1, %v113_v13, 0.0 }
  0x99   :  { %v108_v16 = vadd.f32 %v107_v14, %v106_v12  ;;  %v115_v17 = vrot.slane %v114_v15, 4 }
  0x9b   :  { %v109_v18 = vrot.slane %v108_v16, 2  ;;  %v116_v19 = vadd.f32 %v115_v17, %v114_v15 }
  0x9d   :  { %v110_v20 = vadd.f32 %v109_v18, %v108_v16  ;;  %v117_v21 = vrot.slane %v116_v19, 2 }
  0x9f   :  { %v111_v22 = vrot.slane %v110_v20, 1  ;;  %v118_v23 = vadd.f32 %v117_v21, %v116_v19 }
  0xa1   :  { %v112_v24 = vadd.f32 %v111_v22, %v110_v20  ;;  %v119_v25 = vrot.slane %v118_v23, 1 }
  0xa3   :  { %v120_v26 = vadd.f32 %v119_v25, %v118_v23  ;;  %v121_v27 = vmul.f32 0.125, %v112_v24 }
  0xa5   :  { %v122_v28 = vmul.f32 0.125, %v120_v26  ;;  %v123_v29 = vmul.f32 %v121_v27, %v121_v27 }
  0xa7   :  { %v124_v30 = vsub.f32 %v122_v28, %v123_v29 }
  0xa9   :  { %v126_v31 = vadd.f32 1e-05, %v124_v30 }
  0xab   :  { %231 = vrsqrt.f32 %v126_v31  ;;  %vm133_vm3 = vweird.f32 %v126_v31 }
  0xb1   :  { %v232_v32 = vpop.eup %231 }
  0xb2   :  { %v128_v33 = vmul.f32 %v232_v32, %v126_v31  ;;  %vm134_vm2 = vweird.f32 %v232_v32 }
  0xb3   :  { %vm135_vm4 = vmor %vm133_vm3, %vm134_vm2 }
  0xb4   :  { %v129_v34 = vmul.f32 %v232_v32, %v128_v33 }
  0xb6   :  { %v130_v35 = vmul.f32 0.5, %v129_v34 }
  0xb8   :  { %v131_v36 = vsub.f32 1.5, %v130_v35 }
  0xba   :  { %v132_v38 = vmul.f32 %v232_v32, %v131_v36 }
  0xbc   :  { %v136_v39 = vsel %vm135_vm4, %v232_v32, %v132_v38 }
  0xbd   :  { %v137_v40 = vmul.f32 %v136_v39, %v125_v37 }
  0xbf   :  { %v139_v42 = vmul.f32 %v137_v40, %v121_v27  ;;  %v142_v43 = vperm.slane %v137_v40, 0 }
  0xc1   :  { %v140_v44 = vsub.f32 %v138_v41, %v139_v42  ;;  %v144_v45 = vmul.f32 %v142_v43, %v104_v11 }
  0xc3   :  { %v146_v46 = vperm.slane %v140_v44, 0 }
  0xc5   :  { %v148_v47 = vadd.f32 %v146_v46, %v144_v45 }
  0xc7   :  { %222 = vmatmul.msk.f32.vlgmr.msra.gmra.mxu1 %vm105_vm1, %v148_v47 }
 0x144   :  { %v177_v49 = vpop.f32.mrf.mxu1 }
 0x145   :  { %v178_v50 = vadd.f32 %v230_v48, %v177_v49 }
 0x147   :  { %180 = vmax.xlane.f32.xlu0 %v178_v50 }
 0x1ba   :  { %v181_v51 = vpop.xlane.xlu0 %180 }
 0x1bb   :  { %v182_v52 = vsub.f32 %v178_v50, %v181_v51 }
 0x1bd   :  { %v183_v53 = vmul.f32 1.442695, %v182_v52 }
 0x1bf   :  { %233 = vpow2.f32 %v183_v53 }
 0x1c5   :  { %v234_v54 = vpop.eup %233 }
 0x1c6   :  { %185 = vadd.xlane.f32.xlu0 %v234_v54 }
 0x239   :  { %v186_v55 = vpop.xlane.xlu0 %185 }
 0x23a   :  { %235 = vrcp.f32 %v186_v55  ;;  %v198_v59 = vand.u32 2147483648, %v186_v55  ;;  %v196_v61 = vand.u32 2147483647, %v186_v55  ;;  %vm192_vm6 = vweird.f32 %v186_v55 }
 0x23c   :  { %v199_v63 = vor.u32 1.1754944e-38, %v198_v59  ;;  %vm197_vm8 = vcmp.eq.f32.partialorder %v196_v61, 8.507059e+37 }
 0x240   :  { %v236_v56 = vpop.eup %235 }
 0x241   :  { %v188_v57 = vmul.f32 %v236_v56, %v186_v55  ;;  %vm193_vm5 = vweird.f32 %v236_v56 }
 0x242   :  { %vm194_vm7 = vmor %vm192_vm6, %vm193_vm5 }
 0x243   :  { %v189_v58 = vsub.f32 1.0, %v188_v57 }
 0x245   :  { %v190_v60 = vmul.f32 %v236_v56, %v189_v58 }
 0x247   :  { %v191_v62 = vadd.f32 %v236_v56, %v190_v60 }
 0x249   :  { %v195_v0 = vsel %vm194_vm7, %v236_v56, %v191_v62 }
 0x24a   :  { %v200_v1 = vsel %vm197_vm8, %v199_v63, %v195_v0 }
 0x24b   :  { %v201_v2 = vmul.f32 %v234_v54, %v200_v1 }
 0x24d   :  { %202 = vst [vmem:[#allocation8] sm:$0xff] %v201_v2 }
 0x24e   :  { %213 = dma.vmem_to_hbm [thread:$0]  %s209_s4, 128, %s211_s23, [#allocation4]  }
 0x24f   :  { %337 = dma.done.wait [#allocation4], 128  }
 0x250   :  { %338 = vsyncadd [#allocation4], 4294967168 }
 0x251   :  { %218 = vsyncpa [#allocation3], 1 }
 0x252   :  { %219 = vsyncpa [#allocation6], 1 }
 0x253   :  { %220 = vsyncpa [#allocation4], 1 }

</bundles_post_ra>
